<compile_context>
chip_gen: v5e
topology: v5e:2x2
jax: 0.10.0
libtpu: 0.0.40
codegen_flags: <defaults>
</compile_context>

<pallas_src>
import functools
import math

import jax
import jax.numpy as jnp
from jax import lax
from jax.experimental import pallas as pl
from jax.experimental.pallas import tpu as pltpu


# ----------------------------- in-kernel PRNG --------------------------------
_MASK31 = 0x7FFFFFFF
_ROT = (13, 15, 26, 6, 17, 29, 16, 24)


def _lsr32(x, s):
    """Logical right shift of int32 values by a static s >= 1 (int32-safe)."""
    return ((x >> 1) & _MASK31) >> (s - 1)


def _rotl32(x, r):
    return (x << r) | _lsr32(x, 32 - r)


def _threefry2x32(k0, k1, x0, x1):
    """Reduced-round (8) Threefry-2x32 counter hash; int32 arithmetic (wraps)."""
    k2 = k0 ^ k1 ^ 0x1BD11BDA
    ks = (k0, k1, k2)
    x0 = x0 + k0
    x1 = x1 + k1
    for i in range(8):
        x0 = x0 + x1
        x1 = _rotl32(x1, _ROT[i])
        x1 = x1 ^ x0
        if (i + 1) % 4 == 0:
            s = (i + 1) // 4
            x0 = x0 + ks[s % 3]
            x1 = x1 + ks[(s + 1) % 3] + s
    return x0, x1


def _u01(w):
    """Top 24 bits of a mixed int32 word -> uniform float32 in [0, 1)."""
    return _lsr32(w, 8).astype(jnp.float32) * jnp.float32(1.0 / 16777216.0)


# --------------------------------- kernel ------------------------------------
def _add_noise_kernel(seed_ref, mu_ref, sigma_ref, x_ref, o_ref, *, r_mu, r_sigma):
    tb, tn = x_ref.shape
    nh = (tn + 1) // 2  # half-width: each hash call feeds two output columns

    i = pl.program_id(0)
    j = pl.program_id(1)
    seed = seed_ref[0]

    # Global (row, col) counters for the tile's left half; the two hash output
    # words cover the left/right halves, so every element of every tile uses a
    # unique (stream, counter) pair.
    rows = i * tb + lax.broadcasted_iota(jnp.int32, (tb, nh), 0)
    cols = j * tn + lax.broadcasted_iota(jnp.int32, (tb, nh), 1)

    # Stream 0 -> uniforms for the additive noise; stream 1 -> Box-Muller pair.
    a0, a1 = _threefry2x32(seed, 0x13198A2E, rows, cols)
    b0, b1 = _threefry2x32(seed, 0x03707344, rows, cols)

    u_m = jnp.concatenate([_u01(a0), _u01(a1)], axis=-1)[:, :tn]

    u1 = jnp.maximum(_u01(b0), jnp.float32(1e-9))
    u2 = _u01(b1)
    rad = jnp.sqrt(jnp.float32(-2.0) * jnp.log(u1))
    ang = jnp.float32(2.0 * math.pi) * u2
    z = jnp.concatenate([rad * jnp.cos(ang), rad * jnp.sin(ang)], axis=-1)[:, :tn]

    mu = mu_ref[...]        # (1, tn), broadcast over the batch rows
    sigma = sigma_ref[...]  # (1, tn)

    m_mat = mu + (jnp.float32(2.0) * u_m - jnp.float32(1.0)) * jnp.float32(r_mu)
    s_mat = sigma + jnp.float32(r_sigma) * z

    o_ref[...] = (s_mat * x_ref[...].astype(jnp.float32) + m_mat).astype(o_ref.dtype)


# -------------------------------- wrapper -------------------------------------
def _pick_tile(dim, cap, quantum):
    """Largest multiple of `quantum` that divides `dim` and is <= cap, else dim."""
    if dim <= cap:
        return dim
    t = (cap // quantum) * quantum
    while t >= quantum:
        if dim % t == 0:
            return t
        t -= quantum
    return dim


def _compiler_params():
    cls = getattr(pltpu, "CompilerParams", None) or getattr(pltpu, "TPUCompilerParams", None)
    kwargs = dict(dimension_semantics=("parallel", "parallel"),
                  vmem_limit_bytes=32 * 1024 * 1024)
    if cls is not None:
        try:
            return cls(**kwargs)
        except TypeError:
            return cls(dimension_semantics=("parallel", "parallel"))
    return dict(mosaic=kwargs)


def add_noise(x, key, *, n_mu, n_sigma, r_mu, r_sigma):
    """AddNoise forward: out = sMat * x + mMat, fresh noise derived from `key`."""
    assert x.ndim == 2, "AddNoise expects (batchSize, numOfEntries)"
    B, N = x.shape

    k_mu, k_sigma, k_seed = jax.random.split(key, 3)
    # Per-column parameters, shared across the whole batch (PyTorch semantics).
    mu = jax.random.uniform(k_mu, (1, N), jnp.float32, minval=-n_mu, maxval=n_mu)
    sigma = jax.random.uniform(k_sigma, (1, N), jnp.float32, minval=1.0, maxval=n_sigma)
    # Scalar seed for the in-kernel counter-based PRNG (per-element noise).
    seed = jax.random.randint(k_seed, (1,), 0, jnp.iinfo(jnp.int32).max, dtype=jnp.int32)

    tb = _pick_tile(B, 256, 8)      # sublane tile
    tn = _pick_tile(N, 512, 128)    # lane tile: multiple of 128 -> unmasked vst
    grid = (B // tb, N // tn)

    kernel = functools.partial(_add_noise_kernel, r_mu=float(r_mu), r_sigma=float(r_sigma))

    call_kwargs = {}
    if hasattr(pl, "CostEstimate"):
        call_kwargs["cost_estimate"] = pl.CostEstimate(
            flops=96 * B * N,
            transcendentals=2 * B * N,
            bytes_accessed=int(x.nbytes) + B * N * x.dtype.itemsize + 8 * N + 4,
        )

    return pl.pallas_call(
        kernel,
        out_shape=jax.ShapeDtypeStruct((B, N), x.dtype),
        grid=grid,
        in_specs=[
            pl.BlockSpec(memory_space=pltpu.SMEM),        # seed (1,) scalar
            pl.BlockSpec((1, tn), lambda i, j: (0, j)),   # mu   (per-column)
            pl.BlockSpec((1, tn), lambda i, j: (0, j)),   # sigma (per-column)
            pl.BlockSpec((tb, tn), lambda i, j: (i, j)),  # x
        ],
        out_specs=pl.BlockSpec((tb, tn), lambda i, j: (i, j)),
        compiler_params=_compiler_params(),
        **call_kwargs,
    )(seed, mu, sigma, x)


if __name__ == "__main__":
    # AddNoise hyperparameters.
    n_mu, n_sigma, r_mu, r_sigma = 0.5, 2.0, 0.1, 0.05

    # Small (batchSize, numOfEntries) problem consistent with the module.
    B, N = 8, 256
    root = jax.random.PRNGKey(0)
    kx, knoise = jax.random.split(root)
    x = jax.random.normal(kx, (B, N), dtype=jnp.float32)

    out = add_noise(x, knoise, n_mu=n_mu, n_sigma=n_sigma, r_mu=r_mu, r_sigma=r_sigma)
    out = jax.block_until_ready(out)

    assert out.shape == (B, N) and out.dtype == x.dtype
    assert bool(jnp.all(jnp.isfinite(out)))
    # Loose sanity: sigma in [1, 2] and small r_* => output magnitude ~ |x|.
    assert float(jnp.mean(jnp.abs(out))) > 0.1
    print("KERNEL_OK")
</pallas_src>

<mosaic_0001>
module attributes {stable_mosaic.version = 11 : i64} {
  func.func @_add_noise_kernel(%arg0: i32, %arg1: i32, %arg2: memref<1xi32, #tpu.memory_space<smem>>, %arg3: memref<1x256xf32, #tpu.memory_space<vmem>>, %arg4: memref<1x256xf32, #tpu.memory_space<vmem>>, %arg5: memref<8x256xf32, #tpu.memory_space<vmem>>, %arg6: memref<8x256xf32, #tpu.memory_space<vmem>>) attributes {dimension_semantics = [#tpu.dimension_semantics<parallel>, #tpu.dimension_semantics<parallel>], iteration_bounds = array<i64: 1, 1>, scalar_prefetch = 0 : i64, scratch_operands = 0 : i64, tpu.core_type = #tpu.core_type<tc>, window_params = [{transform_indices = @transform_0, window_bounds = array<i64: 1>}, {transform_indices = @transform_1, window_bounds = array<i64: 1, 256>}, {transform_indices = @transform_2, window_bounds = array<i64: 1, 256>}, {transform_indices = @transform_3, window_bounds = array<i64: 8, 256>}, {transform_indices = @transform_4, window_bounds = array<i64: 8, 256>}]} {
    %c0 = arith.constant 0 : index
    %0 = memref.load %arg2[%c0] : memref<1xi32, #tpu.memory_space<smem>>
    %c8_i32 = arith.constant 8 : i32
    %1 = arith.muli %arg0, %c8_i32 : i32
    %2 = tpu.iota {dimensions = array<i32: 0>} : vector<8x128xi32>
    %3 = vector.broadcast %1 : i32 to vector<8x128xi32>
    %4 = arith.addi %3, %2 : vector<8x128xi32>
    %c256_i32 = arith.constant 256 : i32
    %5 = arith.muli %arg1, %c256_i32 : i32
    %6 = tpu.iota {dimensions = array<i32: 1>} : vector<8x128xi32>
    %7 = vector.broadcast %5 : i32 to vector<8x128xi32>
    %8 = arith.addi %7, %6 : vector<8x128xi32>
    %c320440878_i32 = arith.constant 320440878 : i32
    %9 = arith.xori %0, %c320440878_i32 : i32
    %c466688986_i32 = arith.constant 466688986 : i32
    %10 = arith.xori %9, %c466688986_i32 : i32
    %11 = vector.broadcast %0 : i32 to vector<8x128xi32>
    %12 = arith.addi %4, %11 : vector<8x128xi32>
    %c320440878_i32_0 = arith.constant 320440878 : i32
    %13 = vector.broadcast %c320440878_i32_0 : i32 to vector<8x128xi32>
    %14 = arith.addi %8, %13 : vector<8x128xi32>
    %15 = arith.addi %12, %14 : vector<8x128xi32>
    %c13_i32 = arith.constant 13 : i32
    %16 = vector.broadcast %c13_i32 : i32 to vector<8x128xi32>
    %17 = arith.shli %14, %16 : vector<8x128xi32>
    %c1_i32 = arith.constant 1 : i32
    %18 = vector.broadcast %c1_i32 : i32 to vector<8x128xi32>
    %19 = arith.shrsi %14, %18 : vector<8x128xi32>
    %c2147483647_i32 = arith.constant 2147483647 : i32
    %20 = vector.broadcast %c2147483647_i32 : i32 to vector<8x128xi32>
    %21 = arith.andi %19, %20 : vector<8x128xi32>
    %c18_i32 = arith.constant 18 : i32
    %22 = vector.broadcast %c18_i32 : i32 to vector<8x128xi32>
    %23 = arith.shrsi %21, %22 : vector<8x128xi32>
    %24 = arith.ori %17, %23 : vector<8x128xi32>
    %25 = arith.xori %24, %15 : vector<8x128xi32>
    %26 = arith.addi %15, %25 : vector<8x128xi32>
    %c15_i32 = arith.constant 15 : i32
    %27 = vector.broadcast %c15_i32 : i32 to vector<8x128xi32>
    %28 = arith.shli %25, %27 : vector<8x128xi32>
    %c1_i32_1 = arith.constant 1 : i32
    %29 = vector.broadcast %c1_i32_1 : i32 to vector<8x128xi32>
    %30 = arith.shrsi %25, %29 : vector<8x128xi32>
    %c2147483647_i32_2 = arith.constant 2147483647 : i32
    %31 = vector.broadcast %c2147483647_i32_2 : i32 to vector<8x128xi32>
    %32 = arith.andi %30, %31 : vector<8x128xi32>
    %c16_i32 = arith.constant 16 : i32
    %33 = vector.broadcast %c16_i32 : i32 to vector<8x128xi32>
    %34 = arith.shrsi %32, %33 : vector<8x128xi32>
    %35 = arith.ori %28, %34 : vector<8x128xi32>
    %36 = arith.xori %35, %26 : vector<8x128xi32>
    %37 = arith.addi %26, %36 : vector<8x128xi32>
    %c26_i32 = arith.constant 26 : i32
    %38 = vector.broadcast %c26_i32 : i32 to vector<8x128xi32>
    %39 = arith.shli %36, %38 : vector<8x128xi32>
    %c1_i32_3 = arith.constant 1 : i32
    %40 = vector.broadcast %c1_i32_3 : i32 to vector<8x128xi32>
    %41 = arith.shrsi %36, %40 : vector<8x128xi32>
    %c2147483647_i32_4 = arith.constant 2147483647 : i32
    %42 = vector.broadcast %c2147483647_i32_4 : i32 to vector<8x128xi32>
    %43 = arith.andi %41, %42 : vector<8x128xi32>
    %c5_i32 = arith.constant 5 : i32
    %44 = vector.broadcast %c5_i32 : i32 to vector<8x128xi32>
    %45 = arith.shrsi %43, %44 : vector<8x128xi32>
    %46 = arith.ori %39, %45 : vector<8x128xi32>
    %47 = arith.xori %46, %37 : vector<8x128xi32>
    %48 = arith.addi %37, %47 : vector<8x128xi32>
    %c6_i32 = arith.constant 6 : i32
    %49 = vector.broadcast %c6_i32 : i32 to vector<8x128xi32>
    %50 = arith.shli %47, %49 : vector<8x128xi32>
    %c1_i32_5 = arith.constant 1 : i32
    %51 = vector.broadcast %c1_i32_5 : i32 to vector<8x128xi32>
    %52 = arith.shrsi %47, %51 : vector<8x128xi32>
    %c2147483647_i32_6 = arith.constant 2147483647 : i32
    %53 = vector.broadcast %c2147483647_i32_6 : i32 to vector<8x128xi32>
    %54 = arith.andi %52, %53 : vector<8x128xi32>
    %c25_i32 = arith.constant 25 : i32
    %55 = vector.broadcast %c25_i32 : i32 to vector<8x128xi32>
    %56 = arith.shrsi %54, %55 : vector<8x128xi32>
    %57 = arith.ori %50, %56 : vector<8x128xi32>
    %58 = arith.xori %57, %48 : vector<8x128xi32>
    %c320440878_i32_7 = arith.constant 320440878 : i32
    %59 = vector.broadcast %c320440878_i32_7 : i32 to vector<8x128xi32>
    %60 = arith.addi %48, %59 : vector<8x128xi32>
    %61 = vector.broadcast %10 : i32 to vector<8x128xi32>
    %62 = arith.addi %58, %61 : vector<8x128xi32>
    %c1_i32_8 = arith.constant 1 : i32
    %63 = vector.broadcast %c1_i32_8 : i32 to vector<8x128xi32>
    %64 = arith.addi %62, %63 : vector<8x128xi32>
    %65 = arith.addi %60, %64 : vector<8x128xi32>
    %c17_i32 = arith.constant 17 : i32
    %66 = vector.broadcast %c17_i32 : i32 to vector<8x128xi32>
    %67 = arith.shli %64, %66 : vector<8x128xi32>
    %c1_i32_9 = arith.constant 1 : i32
    %68 = vector.broadcast %c1_i32_9 : i32 to vector<8x128xi32>
    %69 = arith.shrsi %64, %68 : vector<8x128xi32>
    %c2147483647_i32_10 = arith.constant 2147483647 : i32
    %70 = vector.broadcast %c2147483647_i32_10 : i32 to vector<8x128xi32>
    %71 = arith.andi %69, %70 : vector<8x128xi32>
    %c14_i32 = arith.constant 14 : i32
    %72 = vector.broadcast %c14_i32 : i32 to vector<8x128xi32>
    %73 = arith.shrsi %71, %72 : vector<8x128xi32>
    %74 = arith.ori %67, %73 : vector<8x128xi32>
    %75 = arith.xori %74, %65 : vector<8x128xi32>
    %76 = arith.addi %65, %75 : vector<8x128xi32>
    %c29_i32 = arith.constant 29 : i32
    %77 = vector.broadcast %c29_i32 : i32 to vector<8x128xi32>
    %78 = arith.shli %75, %77 : vector<8x128xi32>
    %c1_i32_11 = arith.constant 1 : i32
    %79 = vector.broadcast %c1_i32_11 : i32 to vector<8x128xi32>
    %80 = arith.shrsi %75, %79 : vector<8x128xi32>
    %c2147483647_i32_12 = arith.constant 2147483647 : i32
    %81 = vector.broadcast %c2147483647_i32_12 : i32 to vector<8x128xi32>
    %82 = arith.andi %80, %81 : vector<8x128xi32>
    %c2_i32 = arith.constant 2 : i32
    %83 = vector.broadcast %c2_i32 : i32 to vector<8x128xi32>
    %84 = arith.shrsi %82, %83 : vector<8x128xi32>
    %85 = arith.ori %78, %84 : vector<8x128xi32>
    %86 = arith.xori %85, %76 : vector<8x128xi32>
    %87 = arith.addi %76, %86 : vector<8x128xi32>
    %c16_i32_13 = arith.constant 16 : i32
    %88 = vector.broadcast %c16_i32_13 : i32 to vector<8x128xi32>
    %89 = arith.shli %86, %88 : vector<8x128xi32>
    %c1_i32_14 = arith.constant 1 : i32
    %90 = vector.broadcast %c1_i32_14 : i32 to vector<8x128xi32>
    %91 = arith.shrsi %86, %90 : vector<8x128xi32>
    %c2147483647_i32_15 = arith.constant 2147483647 : i32
    %92 = vector.broadcast %c2147483647_i32_15 : i32 to vector<8x128xi32>
    %93 = arith.andi %91, %92 : vector<8x128xi32>
    %c15_i32_16 = arith.constant 15 : i32
    %94 = vector.broadcast %c15_i32_16 : i32 to vector<8x128xi32>
    %95 = arith.shrsi %93, %94 : vector<8x128xi32>
    %96 = arith.ori %89, %95 : vector<8x128xi32>
    %97 = arith.xori %96, %87 : vector<8x128xi32>
    %98 = arith.addi %87, %97 : vector<8x128xi32>
    %c24_i32 = arith.constant 24 : i32
    %99 = vector.broadcast %c24_i32 : i32 to vector<8x128xi32>
    %100 = arith.shli %97, %99 : vector<8x128xi32>
    %c1_i32_17 = arith.constant 1 : i32
    %101 = vector.broadcast %c1_i32_17 : i32 to vector<8x128xi32>
    %102 = arith.shrsi %97, %101 : vector<8x128xi32>
    %c2147483647_i32_18 = arith.constant 2147483647 : i32
    %103 = vector.broadcast %c2147483647_i32_18 : i32 to vector<8x128xi32>
    %104 = arith.andi %102, %103 : vector<8x128xi32>
    %c7_i32 = arith.constant 7 : i32
    %105 = vector.broadcast %c7_i32 : i32 to vector<8x128xi32>
    %106 = arith.shrsi %104, %105 : vector<8x128xi32>
    %107 = arith.ori %100, %106 : vector<8x128xi32>
    %108 = arith.xori %107, %98 : vector<8x128xi32>
    %109 = vector.broadcast %10 : i32 to vector<8x128xi32>
    %110 = arith.addi %98, %109 : vector<8x128xi32>
    %111 = vector.broadcast %0 : i32 to vector<8x128xi32>
    %112 = arith.addi %108, %111 : vector<8x128xi32>
    %c2_i32_19 = arith.constant 2 : i32
    %113 = vector.broadcast %c2_i32_19 : i32 to vector<8x128xi32>
    %114 = arith.addi %112, %113 : vector<8x128xi32>
    %c57701188_i32 = arith.constant 57701188 : i32
    %115 = arith.xori %0, %c57701188_i32 : i32
    %c466688986_i32_20 = arith.constant 466688986 : i32
    %116 = arith.xori %115, %c466688986_i32_20 : i32
    %117 = vector.broadcast %0 : i32 to vector<8x128xi32>
    %118 = arith.addi %4, %117 : vector<8x128xi32>
    %c57701188_i32_21 = arith.constant 57701188 : i32
    %119 = vector.broadcast %c57701188_i32_21 : i32 to vector<8x128xi32>
    %120 = arith.addi %8, %119 : vector<8x128xi32>
    %121 = arith.addi %118, %120 : vector<8x128xi32>
    %c13_i32_22 = arith.constant 13 : i32
    %122 = vector.broadcast %c13_i32_22 : i32 to vector<8x128xi32>
    %123 = arith.shli %120, %122 : vector<8x128xi32>
    %c1_i32_23 = arith.constant 1 : i32
    %124 = vector.broadcast %c1_i32_23 : i32 to vector<8x128xi32>
    %125 = arith.shrsi %120, %124 : vector<8x128xi32>
    %c2147483647_i32_24 = arith.constant 2147483647 : i32
    %126 = vector.broadcast %c2147483647_i32_24 : i32 to vector<8x128xi32>
    %127 = arith.andi %125, %126 : vector<8x128xi32>
    %c18_i32_25 = arith.constant 18 : i32
    %128 = vector.broadcast %c18_i32_25 : i32 to vector<8x128xi32>
    %129 = arith.shrsi %127, %128 : vector<8x128xi32>
    %130 = arith.ori %123, %129 : vector<8x128xi32>
    %131 = arith.xori %130, %121 : vector<8x128xi32>
    %132 = arith.addi %121, %131 : vector<8x128xi32>
    %c15_i32_26 = arith.constant 15 : i32
    %133 = vector.broadcast %c15_i32_26 : i32 to vector<8x128xi32>
    %134 = arith.shli %131, %133 : vector<8x128xi32>
    %c1_i32_27 = arith.constant 1 : i32
    %135 = vector.broadcast %c1_i32_27 : i32 to vector<8x128xi32>
    %136 = arith.shrsi %131, %135 : vector<8x128xi32>
    %c2147483647_i32_28 = arith.constant 2147483647 : i32
    %137 = vector.broadcast %c2147483647_i32_28 : i32 to vector<8x128xi32>
    %138 = arith.andi %136, %137 : vector<8x128xi32>
    %c16_i32_29 = arith.constant 16 : i32
    %139 = vector.broadcast %c16_i32_29 : i32 to vector<8x128xi32>
    %140 = arith.shrsi %138, %139 : vector<8x128xi32>
    %141 = arith.ori %134, %140 : vector<8x128xi32>
    %142 = arith.xori %141, %132 : vector<8x128xi32>
    %143 = arith.addi %132, %142 : vector<8x128xi32>
    %c26_i32_30 = arith.constant 26 : i32
    %144 = vector.broadcast %c26_i32_30 : i32 to vector<8x128xi32>
    %145 = arith.shli %142, %144 : vector<8x128xi32>
    %c1_i32_31 = arith.constant 1 : i32
    %146 = vector.broadcast %c1_i32_31 : i32 to vector<8x128xi32>
    %147 = arith.shrsi %142, %146 : vector<8x128xi32>
    %c2147483647_i32_32 = arith.constant 2147483647 : i32
    %148 = vector.broadcast %c2147483647_i32_32 : i32 to vector<8x128xi32>
    %149 = arith.andi %147, %148 : vector<8x128xi32>
    %c5_i32_33 = arith.constant 5 : i32
    %150 = vector.broadcast %c5_i32_33 : i32 to vector<8x128xi32>
    %151 = arith.shrsi %149, %150 : vector<8x128xi32>
    %152 = arith.ori %145, %151 : vector<8x128xi32>
    %153 = arith.xori %152, %143 : vector<8x128xi32>
    %154 = arith.addi %143, %153 : vector<8x128xi32>
    %c6_i32_34 = arith.constant 6 : i32
    %155 = vector.broadcast %c6_i32_34 : i32 to vector<8x128xi32>
    %156 = arith.shli %153, %155 : vector<8x128xi32>
    %c1_i32_35 = arith.constant 1 : i32
    %157 = vector.broadcast %c1_i32_35 : i32 to vector<8x128xi32>
    %158 = arith.shrsi %153, %157 : vector<8x128xi32>
    %c2147483647_i32_36 = arith.constant 2147483647 : i32
    %159 = vector.broadcast %c2147483647_i32_36 : i32 to vector<8x128xi32>
    %160 = arith.andi %158, %159 : vector<8x128xi32>
    %c25_i32_37 = arith.constant 25 : i32
    %161 = vector.broadcast %c25_i32_37 : i32 to vector<8x128xi32>
    %162 = arith.shrsi %160, %161 : vector<8x128xi32>
    %163 = arith.ori %156, %162 : vector<8x128xi32>
    %164 = arith.xori %163, %154 : vector<8x128xi32>
    %c57701188_i32_38 = arith.constant 57701188 : i32
    %165 = vector.broadcast %c57701188_i32_38 : i32 to vector<8x128xi32>
    %166 = arith.addi %154, %165 : vector<8x128xi32>
    %167 = vector.broadcast %116 : i32 to vector<8x128xi32>
    %168 = arith.addi %164, %167 : vector<8x128xi32>
    %c1_i32_39 = arith.constant 1 : i32
    %169 = vector.broadcast %c1_i32_39 : i32 to vector<8x128xi32>
    %170 = arith.addi %168, %169 : vector<8x128xi32>
    %171 = arith.addi %166, %170 : vector<8x128xi32>
    %c17_i32_40 = arith.constant 17 : i32
    %172 = vector.broadcast %c17_i32_40 : i32 to vector<8x128xi32>
    %173 = arith.shli %170, %172 : vector<8x128xi32>
    %c1_i32_41 = arith.constant 1 : i32
    %174 = vector.broadcast %c1_i32_41 : i32 to vector<8x128xi32>
    %175 = arith.shrsi %170, %174 : vector<8x128xi32>
    %c2147483647_i32_42 = arith.constant 2147483647 : i32
    %176 = vector.broadcast %c2147483647_i32_42 : i32 to vector<8x128xi32>
    %177 = arith.andi %175, %176 : vector<8x128xi32>
    %c14_i32_43 = arith.constant 14 : i32
    %178 = vector.broadcast %c14_i32_43 : i32 to vector<8x128xi32>
    %179 = arith.shrsi %177, %178 : vector<8x128xi32>
    %180 = arith.ori %173, %179 : vector<8x128xi32>
    %181 = arith.xori %180, %171 : vector<8x128xi32>
    %182 = arith.addi %171, %181 : vector<8x128xi32>
    %c29_i32_44 = arith.constant 29 : i32
    %183 = vector.broadcast %c29_i32_44 : i32 to vector<8x128xi32>
    %184 = arith.shli %181, %183 : vector<8x128xi32>
    %c1_i32_45 = arith.constant 1 : i32
    %185 = vector.broadcast %c1_i32_45 : i32 to vector<8x128xi32>
    %186 = arith.shrsi %181, %185 : vector<8x128xi32>
    %c2147483647_i32_46 = arith.constant 2147483647 : i32
    %187 = vector.broadcast %c2147483647_i32_46 : i32 to vector<8x128xi32>
    %188 = arith.andi %186, %187 : vector<8x128xi32>
    %c2_i32_47 = arith.constant 2 : i32
    %189 = vector.broadcast %c2_i32_47 : i32 to vector<8x128xi32>
    %190 = arith.shrsi %188, %189 : vector<8x128xi32>
    %191 = arith.ori %184, %190 : vector<8x128xi32>
    %192 = arith.xori %191, %182 : vector<8x128xi32>
    %193 = arith.addi %182, %192 : vector<8x128xi32>
    %c16_i32_48 = arith.constant 16 : i32
    %194 = vector.broadcast %c16_i32_48 : i32 to vector<8x128xi32>
    %195 = arith.shli %192, %194 : vector<8x128xi32>
    %c1_i32_49 = arith.constant 1 : i32
    %196 = vector.broadcast %c1_i32_49 : i32 to vector<8x128xi32>
    %197 = arith.shrsi %192, %196 : vector<8x128xi32>
    %c2147483647_i32_50 = arith.constant 2147483647 : i32
    %198 = vector.broadcast %c2147483647_i32_50 : i32 to vector<8x128xi32>
    %199 = arith.andi %197, %198 : vector<8x128xi32>
    %c15_i32_51 = arith.constant 15 : i32
    %200 = vector.broadcast %c15_i32_51 : i32 to vector<8x128xi32>
    %201 = arith.shrsi %199, %200 : vector<8x128xi32>
    %202 = arith.ori %195, %201 : vector<8x128xi32>
    %203 = arith.xori %202, %193 : vector<8x128xi32>
    %204 = arith.addi %193, %203 : vector<8x128xi32>
    %c24_i32_52 = arith.constant 24 : i32
    %205 = vector.broadcast %c24_i32_52 : i32 to vector<8x128xi32>
    %206 = arith.shli %203, %205 : vector<8x128xi32>
    %c1_i32_53 = arith.constant 1 : i32
    %207 = vector.broadcast %c1_i32_53 : i32 to vector<8x128xi32>
    %208 = arith.shrsi %203, %207 : vector<8x128xi32>
    %c2147483647_i32_54 = arith.constant 2147483647 : i32
    %209 = vector.broadcast %c2147483647_i32_54 : i32 to vector<8x128xi32>
    %210 = arith.andi %208, %209 : vector<8x128xi32>
    %c7_i32_55 = arith.constant 7 : i32
    %211 = vector.broadcast %c7_i32_55 : i32 to vector<8x128xi32>
    %212 = arith.shrsi %210, %211 : vector<8x128xi32>
    %213 = arith.ori %206, %212 : vector<8x128xi32>
    %214 = arith.xori %213, %204 : vector<8x128xi32>
    %215 = vector.broadcast %116 : i32 to vector<8x128xi32>
    %216 = arith.addi %204, %215 : vector<8x128xi32>
    %217 = vector.broadcast %0 : i32 to vector<8x128xi32>
    %218 = arith.addi %214, %217 : vector<8x128xi32>
    %c2_i32_56 = arith.constant 2 : i32
    %219 = vector.broadcast %c2_i32_56 : i32 to vector<8x128xi32>
    %220 = arith.addi %218, %219 : vector<8x128xi32>
    %c1_i32_57 = arith.constant 1 : i32
    %221 = vector.broadcast %c1_i32_57 : i32 to vector<8x128xi32>
    %222 = arith.shrsi %110, %221 : vector<8x128xi32>
    %c2147483647_i32_58 = arith.constant 2147483647 : i32
    %223 = vector.broadcast %c2147483647_i32_58 : i32 to vector<8x128xi32>
    %224 = arith.andi %222, %223 : vector<8x128xi32>
    %c7_i32_59 = arith.constant 7 : i32
    %225 = vector.broadcast %c7_i32_59 : i32 to vector<8x128xi32>
    %226 = arith.shrsi %224, %225 : vector<8x128xi32>
    %227 = arith.sitofp %226 : vector<8x128xi32> to vector<8x128xf32>
    %cst = arith.constant 5.96046448E-8 : f32
    %228 = vector.broadcast %cst : f32 to vector<8x128xf32>
    %229 = arith.mulf %227, %228 : vector<8x128xf32>
    %c1_i32_60 = arith.constant 1 : i32
    %230 = vector.broadcast %c1_i32_60 : i32 to vector<8x128xi32>
    %231 = arith.shrsi %114, %230 : vector<8x128xi32>
    %c2147483647_i32_61 = arith.constant 2147483647 : i32
    %232 = vector.broadcast %c2147483647_i32_61 : i32 to vector<8x128xi32>
    %233 = arith.andi %231, %232 : vector<8x128xi32>
    %c7_i32_62 = arith.constant 7 : i32
    %234 = vector.broadcast %c7_i32_62 : i32 to vector<8x128xi32>
    %235 = arith.shrsi %233, %234 : vector<8x128xi32>
    %236 = arith.sitofp %235 : vector<8x128xi32> to vector<8x128xf32>
    %cst_63 = arith.constant 5.96046448E-8 : f32
    %237 = vector.broadcast %cst_63 : f32 to vector<8x128xf32>
    %238 = arith.mulf %236, %237 : vector<8x128xf32>
    %239 = tpu.concatenate %229, %238 in 1 : vector<8x128xf32>, vector<8x128xf32> -> vector<8x256xf32>
    %c1_i32_64 = arith.constant 1 : i32
    %240 = vector.broadcast %c1_i32_64 : i32 to vector<8x128xi32>
    %241 = arith.shrsi %216, %240 : vector<8x128xi32>
    %c2147483647_i32_65 = arith.constant 2147483647 : i32
    %242 = vector.broadcast %c2147483647_i32_65 : i32 to vector<8x128xi32>
    %243 = arith.andi %241, %242 : vector<8x128xi32>
    %c7_i32_66 = arith.constant 7 : i32
    %244 = vector.broadcast %c7_i32_66 : i32 to vector<8x128xi32>
    %245 = arith.shrsi %243, %244 : vector<8x128xi32>
    %246 = arith.sitofp %245 : vector<8x128xi32> to vector<8x128xf32>
    %cst_67 = arith.constant 5.96046448E-8 : f32
    %247 = vector.broadcast %cst_67 : f32 to vector<8x128xf32>
    %248 = arith.mulf %246, %247 : vector<8x128xf32>
    %cst_68 = arith.constant 9.99999971E-10 : f32
    %249 = vector.broadcast %cst_68 : f32 to vector<8x128xf32>
    %250 = arith.maximumf %248, %249 : vector<8x128xf32>
    %c1_i32_69 = arith.constant 1 : i32
    %251 = vector.broadcast %c1_i32_69 : i32 to vector<8x128xi32>
    %252 = arith.shrsi %220, %251 : vector<8x128xi32>
    %c2147483647_i32_70 = arith.constant 2147483647 : i32
    %253 = vector.broadcast %c2147483647_i32_70 : i32 to vector<8x128xi32>
    %254 = arith.andi %252, %253 : vector<8x128xi32>
    %c7_i32_71 = arith.constant 7 : i32
    %255 = vector.broadcast %c7_i32_71 : i32 to vector<8x128xi32>
    %256 = arith.shrsi %254, %255 : vector<8x128xi32>
    %257 = arith.sitofp %256 : vector<8x128xi32> to vector<8x128xf32>
    %cst_72 = arith.constant 5.96046448E-8 : f32
    %258 = vector.broadcast %cst_72 : f32 to vector<8x128xf32>
    %259 = arith.mulf %257, %258 : vector<8x128xf32>
    %260 = math.log %250 : vector<8x128xf32>
    %cst_73 = arith.constant -2.000000e+00 : f32
    %261 = vector.broadcast %cst_73 : f32 to vector<8x128xf32>
    %262 = arith.mulf %261, %260 : vector<8x128xf32>
    %263 = math.sqrt %262 : vector<8x128xf32>
    %cst_74 = arith.constant 6.28318548 : f32
    %264 = vector.broadcast %cst_74 : f32 to vector<8x128xf32>
    %265 = arith.mulf %264, %259 : vector<8x128xf32>
    %266 = math.cos %265 : vector<8x128xf32>
    %267 = arith.mulf %263, %266 : vector<8x128xf32>
    %268 = math.sin %265 : vector<8x128xf32>
    %269 = arith.mulf %263, %268 : vector<8x128xf32>
    %270 = tpu.concatenate %267, %269 in 1 : vector<8x128xf32>, vector<8x128xf32> -> vector<8x256xf32>
    %c0_75 = arith.constant 0 : index
    %c0_76 = arith.constant 0 : index
    %271 = vector.load %arg3[%c0_75, %c0_76] : memref<1x256xf32, #tpu.memory_space<vmem>>, vector<1x256xf32>
    %c0_77 = arith.constant 0 : index
    %c0_78 = arith.constant 0 : index
    %272 = vector.load %arg4[%c0_77, %c0_78] : memref<1x256xf32, #tpu.memory_space<vmem>>, vector<1x256xf32>
    %cst_79 = arith.constant 2.000000e+00 : f32
    %273 = vector.broadcast %cst_79 : f32 to vector<8x256xf32>
    %274 = arith.mulf %273, %239 : vector<8x256xf32>
    %cst_80 = arith.constant 1.000000e+00 : f32
    %275 = vector.broadcast %cst_80 : f32 to vector<8x256xf32>
    %276 = arith.subf %274, %275 : vector<8x256xf32>
    %cst_81 = arith.constant 1.000000e-01 : f32
    %277 = vector.broadcast %cst_81 : f32 to vector<8x256xf32>
    %278 = arith.mulf %276, %277 : vector<8x256xf32>
    %279 = vector.broadcast %271 : vector<1x256xf32> to vector<8x256xf32>
    %280 = arith.addf %279, %278 : vector<8x256xf32>
    %cst_82 = arith.constant 5.000000e-02 : f32
    %281 = vector.broadcast %cst_82 : f32 to vector<8x256xf32>
    %282 = arith.mulf %281, %270 : vector<8x256xf32>
    %283 = vector.broadcast %272 : vector<1x256xf32> to vector<8x256xf32>
    %284 = arith.addf %283, %282 : vector<8x256xf32>
    %c0_83 = arith.constant 0 : index
    %c0_84 = arith.constant 0 : index
    %285 = vector.load %arg5[%c0_83, %c0_84] : memref<8x256xf32, #tpu.memory_space<vmem>>, vector<8x256xf32>
    %286 = arith.mulf %284, %285 : vector<8x256xf32>
    %287 = arith.addf %286, %280 : vector<8x256xf32>
    %c0_85 = arith.constant 0 : index
    %c0_86 = arith.constant 0 : index
    %288 = vector.load %arg6[%c0_85, %c0_86] : memref<8x256xf32, #tpu.memory_space<vmem>>, vector<8x256xf32>
    tpu.vector_store %arg6[%c0_85, %c0_86], %287 {strides = array<i32>} : memref<8x256xf32, #tpu.memory_space<vmem>>, vector<8x256xf32>,
    return
  }
  func.func @transform_0(%arg0: i32, %arg1: i32) -> i32 {
    %c0_i32 = arith.constant 0 : i32
    %c0_i32_0 = arith.constant 0 : i32
    return %c0_i32 : i32
  }
  func.func @transform_1(%arg0: i32, %arg1: i32) -> (i32, i32) {
    %c0_i32 = arith.constant 0 : i32
    %c0_i32_0 = arith.constant 0 : i32
    return %c0_i32, %arg1 : i32, i32
  }
  func.func @transform_2(%arg0: i32, %arg1: i32) -> (i32, i32) {
    %c0_i32 = arith.constant 0 : i32
    %c0_i32_0 = arith.constant 0 : i32
    return %c0_i32, %arg1 : i32, i32
  }
  func.func @transform_3(%arg0: i32, %arg1: i32) -> (i32, i32) {
    %c0_i32 = arith.constant 0 : i32
    return %arg0, %arg1 : i32, i32
  }
  func.func @transform_4(%arg0: i32, %arg1: i32) -> (i32, i32) {
    %c0_i32 = arith.constant 0 : i32
    return %arg0, %arg1 : i32, i32
  }
}

</mosaic_0001>

<bundles_post_ra>
// kernel: tpu_custom_call.1
= control target key start
LH: loop header
LB: loop body
LE: loop exit
PB: predicated region body
PF: predicated region fallthrough
CT: control target
= control target key end

     0   :  { %10 = vsyncpa [#allocation4], 0  ;;  %s851_s0 = inlined_call_operand.<no memory space> [shape: s32[1], index: 0, kind: input, shape index: {}]   ;;  %s852_s1 = inlined_call_operand.vmem [shape: f32[1,256], index: 1, kind: input, shape index: {}]   ;;  %s853_s2 = inlined_call_operand.hbm [shape: f32[1,256], index: 2, kind: input, shape index: {}]   ;;  %s854_s3 = inlined_call_operand.hbm [shape: f32[8,256], index: 3, kind: input, shape index: {}]   ;;  %s855_s4 = inlined_call_operand.hbm [shape: f32[8,256], index: 4, kind: output, shape index: {}]  }
   0x1   :  { %11 = vsyncpa [#allocation7], 0 }
   0x2   :  { %12 = vsyncpa [#allocation5], 0  ;;  %s22_s17 = sshll.u32 %s853_s2, 4  ;;  %s710_s18 = smov [#allocation3]   ;;  %s23_s17 = int_to_ptr.hbm [resolvable:$true] %s22_s17 }
   0x3   :  { %s24_s19 = sshll.u32 %s710_s18, 4  ;;  %s33_s22 = sshll.u32 %s854_s3, 4  ;;  %s25_s19 = int_to_ptr.vmem [resolvable:$true] %s24_s19  ;;  %s34_s22 = int_to_ptr.hbm [resolvable:$true] %s33_s22 }
   0x4   :  { %27 = dma.hbm_to_vmem [thread:$0]  %s23_s17, 32, %s25_s19, [#allocation4]  }
   0x5   :  { %s711_s23 = smov [#allocation6]  }
   0x6   :  { %s35_s24 = sshll.u32 %s711_s23, 4  ;;  %s36_s24 = int_to_ptr.vmem [resolvable:$true] %s35_s24 }
   0x7   :  { %38 = dma.hbm_to_vmem [thread:$0]  %s34_s22, 256, %s36_s24, [#allocation7]  }
   0x8   :  { %704 = dma.done.wait [#allocation4], 32  }
   0x9   :  { %705 = vsyncadd [#allocation4], 4294967264 }
   0xa   :  { %706 = dma.done.wait [#allocation7], 256  }
   0xb   :  { %707 = vsyncadd [#allocation7], 4294967040  ;;  %v49_v0 = vlaneseq  ;;  %v754_v1 = vstv %s851_s0  ;;  %s58_s27 = sxor.u32 320440878, %s851_s0  ;;  %s126_s30 = sxor.u32 57701188, %s851_s0 }
   0xc   :  { %s763_s5 = sxor.u32 466688986, %s58_s27  ;;  %s765_s6 = sxor.u32 466688986, %s126_s30 }
   0xd   :  { %v50_v2 = vshrl.u32 %v49_v0, 7  ;;  %v55_v3 = vand.u32 127, %v49_v0  ;;  %v92_v52 = vstv %s763_s5  ;;  %v158_v55 = vstv %s765_s6  ;;  %s579_s11 = sshll.u32 %s855_s4, 4  ;;  %s580_s11 = int_to_ptr.hbm [resolvable:$true] %s579_s11 }
   0xf   :  { %v61_v4 = vadd.s32 %v754_v1, %v50_v2  ;;  %v62_v5 = vadd.s32 320440878, %v55_v3  ;;  %v128_v6 = vadd.s32 57701188, %v55_v3 }
  0x11   :  { %v63_v7 = vadd.s32 %v62_v5, %v61_v4  ;;  %v64_v8 = vshll.u32 %v62_v5, 13  ;;  %v590_v9 = vshrl.u32 %v62_v5, 1  ;;  %v130_v10 = vshll.u32 %v128_v6, 13 }
  0x12   :  { %v598_v11 = vshrl.u32 %v128_v6, 1  ;;  %v129_v13 = vadd.s32 %v128_v6, %v61_v4 }
  0x13   :  { %v67_v12 = vshra.s32 %v590_v9, 18 }
  0x14   :  { %v133_v14 = vshra.s32 %v598_v11, 18 }
  0x15   :  { %v68_v15 = vor.u32 %v67_v12, %v64_v8 }
  0x16   :  { %v134_v16 = vor.u32 %v133_v14, %v130_v10 }
  0x17   :  { %v69_v17 = vxor.u32 %v68_v15, %v63_v7 }
  0x18   :  { %v135_v18 = vxor.u32 %v134_v16, %v129_v13 }
  0x19   :  { %v70_v19 = vadd.s32 %v69_v17, %v63_v7  ;;  %v71_v20 = vshll.u32 %v69_v17, 15  ;;  %v591_v21 = vshrl.u32 %v69_v17, 1 }
  0x1a   :  { %v137_v22 = vshll.u32 %v135_v18, 15  ;;  %v599_v23 = vshrl.u32 %v135_v18, 1  ;;  %v136_v25 = vadd.s32 %v135_v18, %v129_v13 }
  0x1b   :  { %v74_v24 = vshra.s32 %v591_v21, 16 }
  0x1c   :  { %v140_v26 = vshra.s32 %v599_v23, 16 }
  0x1d   :  { %v75_v27 = vor.u32 %v74_v24, %v71_v20 }
  0x1e   :  { %v141_v28 = vor.u32 %v140_v26, %v137_v22 }
  0x1f   :  { %v76_v29 = vxor.u32 %v75_v27, %v70_v19 }
  0x20   :  { %v142_v30 = vxor.u32 %v141_v28, %v136_v25 }
  0x21   :  { %v77_v31 = vadd.s32 %v76_v29, %v70_v19  ;;  %v78_v32 = vshll.u32 %v76_v29, 26  ;;  %v592_v33 = vshrl.u32 %v76_v29, 1 }
  0x22   :  { %v144_v34 = vshll.u32 %v142_v30, 26  ;;  %v600_v35 = vshrl.u32 %v142_v30, 1  ;;  %v143_v37 = vadd.s32 %v142_v30, %v136_v25 }
  0x23   :  { %v81_v36 = vshra.s32 %v592_v33, 5 }
  0x24   :  { %v147_v38 = vshra.s32 %v600_v35, 5 }
  0x25   :  { %v82_v39 = vor.u32 %v81_v36, %v78_v32 }
  0x26   :  { %v148_v40 = vor.u32 %v147_v38, %v144_v34 }
  0x27   :  { %v83_v41 = vxor.u32 %v82_v39, %v77_v31 }
  0x28   :  { %v149_v42 = vxor.u32 %v148_v40, %v143_v37 }
  0x29   :  { %v84_v43 = vadd.s32 %v83_v41, %v77_v31  ;;  %v85_v44 = vshll.u32 %v83_v41, 6  ;;  %v593_v45 = vshrl.u32 %v83_v41, 1 }
  0x2a   :  { %v151_v46 = vshll.u32 %v149_v42, 6  ;;  %v601_v47 = vshrl.u32 %v149_v42, 1  ;;  %v150_v49 = vadd.s32 %v149_v42, %v143_v37 }
  0x2b   :  { %v88_v48 = vshra.s32 %v593_v45, 25  ;;  %v91_v57 = vadd.s32 320440878, %v84_v43 }
  0x2c   :  { %v154_v50 = vshra.s32 %v601_v47, 25  ;;  %v157_v61 = vadd.s32 57701188, %v150_v49 }
  0x2d   :  { %v89_v51 = vor.u32 %v88_v48, %v85_v44 }
  0x2e   :  { %v155_v53 = vor.u32 %v154_v50, %v151_v46 }
  0x2f   :  { %v90_v54 = vxor.u32 %v89_v51, %v84_v43 }
  0x30   :  { %v156_v56 = vxor.u32 %v155_v53, %v150_v49 }
  0x31   :  { %v93_v58 = vadd.s32 %v92_v52, %v90_v54 }
  0x32   :  { %v159_v59 = vadd.s32 %v158_v55, %v156_v56 }
  0x33   :  { %v94_v60 = vadd.s32 1, %v93_v58 }
  0x34   :  { %v160_v62 = vadd.s32 1, %v159_v59 }
  0x35   :  { %v95_v63 = vadd.s32 %v94_v60, %v91_v57  ;;  %v96_v0 = vshll.u32 %v94_v60, 17  ;;  %v594_v2 = vshrl.u32 %v94_v60, 1 }
  0x36   :  { %v162_v3 = vshll.u32 %v160_v62, 17  ;;  %v602_v4 = vshrl.u32 %v160_v62, 1  ;;  %v161_v6 = vadd.s32 %v160_v62, %v157_v61 }
  0x37   :  { %v99_v5 = vshra.s32 %v594_v2, 14 }
  0x38   :  { %v165_v7 = vshra.s32 %v602_v4, 14 }
  0x39   :  { %v100_v8 = vor.u32 %v99_v5, %v96_v0  ;;  %v712_v5 = vmov 683565275  }
  0x3a   :  { %v166_v9 = vor.u32 %v165_v7, %v162_v3  ;;  %v713_v7 = vmov 2475754826  }
  0x3b   :  { %v101_v10 = vxor.u32 %v100_v8, %v95_v63 }
  0x3c   :  { %v167_v11 = vxor.u32 %v166_v9, %v161_v6  ;;  %v714_v9 = vmov 2131351028  }
  0x3d   :  { %v102_v12 = vadd.s32 %v101_v10, %v95_v63  ;;  %v103_v13 = vshll.u32 %v101_v10, 29  ;;  %v595_v14 = vshrl.u32 %v101_v10, 1 }
  0x3e   :  { %v169_v15 = vshll.u32 %v167_v11, 29  ;;  %v603_v16 = vshrl.u32 %v167_v11, 1  ;;  %v168_v18 = vadd.s32 %v167_v11, %v161_v6  ;;  %v715_v11 = vmov 2102212464  }
  0x3f   :  { %v106_v17 = vshra.s32 %v595_v14, 2 }
  0x40   :  { %v172_v19 = vshra.s32 %v603_v16, 2 }
  0x41   :  { %v107_v20 = vor.u32 %v106_v17, %v103_v13  ;;  %v716_v13 = vmov 920167782  }
  0x42   :  { %v173_v21 = vor.u32 %v172_v19, %v169_v15  ;;  %v717_v19 = vmov 1326507024  }
  0x43   :  { %v108_v22 = vxor.u32 %v107_v20, %v102_v12 }
  0x44   :  { %v174_v23 = vxor.u32 %v173_v21, %v168_v18 }
  0x45   :  { %v109_v24 = vadd.s32 %v108_v22, %v102_v12  ;;  %v110_v25 = vshll.u32 %v108_v22, 16  ;;  %v596_v26 = vshrl.u32 %v108_v22, 1 }
  0x46   :  { %v176_v27 = vshll.u32 %v174_v23, 16  ;;  %v604_v28 = vshrl.u32 %v174_v23, 1  ;;  %v175_v30 = vadd.s32 %v174_v23, %v168_v18 }
  0x47   :  { %v113_v29 = vshra.s32 %v596_v26, 15 }
  0x48   :  { %v179_v31 = vshra.s32 %v604_v28, 15 }
  0x49   :  { %v114_v32 = vor.u32 %v113_v29, %v110_v25 }
  0x4a   :  { %v180_v33 = vor.u32 %v179_v31, %v176_v27 }
  0x4b   :  { %v115_v34 = vxor.u32 %v114_v32, %v109_v24 }
  0x4c   :  { %v181_v35 = vxor.u32 %v180_v33, %v175_v30 }
  0x4d   :  { %v771_v36 = vadd.s32 %v115_v34, %v109_v24  ;;  %v117_v37 = vshll.u32 %v115_v34, 24  ;;  %v597_v38 = vshrl.u32 %v115_v34, 1 }
  0x4e   :  { %v182_v39 = vadd.s32 %v181_v35, %v175_v30  ;;  %v183_v40 = vshll.u32 %v181_v35, 24  ;;  %v605_v41 = vshrl.u32 %v181_v35, 1 }
  0x4f   :  { %v120_v42 = vshra.s32 %v597_v38, 7 }
  0x50   :  { %v186_v43 = vshra.s32 %v605_v41, 7  ;;  %v773_v44 = vadd.s32 %v182_v39, %v158_v55 }
  0x51   :  { %v775_v45 = vor.u32 %v120_v42, %v117_v37 }
  0x52   :  { %v187_v46 = vor.u32 %v186_v43, %v183_v40  ;;  %v608_v28 = vshrl.u32 %v773_v44, 1 }
  0x53   :  { %v122_v47 = vxor.u32 %v775_v45, %v771_v36 }
  0x54   :  { %v188_v48 = vxor.u32 %v187_v46, %v182_v39  ;;  %v204_v42 = vshra.s32 %v608_v28, 7 }
  0x56   :  { %v190_v49 = vadd.s32 %v188_v48, %v754_v1 }
  0x58   :  { %v191_v50 = vadd.s32 2, %v190_v49 }
  0x5a   :  { %v609_v51 = vshrl.u32 %v191_v50, 1 }
  0x5c   :  { %v210_v53 = vshra.s32 %v609_v51, 7 }
  0x5e   :  { %v211_v54 = vcvt.s32.f32 %v210_v53 }
  0x60   :  { %v212_v56 = vmul.f32 5.9604645e-08, %v211_v54 }
  0x62   :  { %v780_v57 = vmul.f32 6.2831855, %v212_v56 }
  0x64   :  { %v232_v58 = vand.u32 2139095040, %v780_v57  ;;  %v229_v59 = vand.u32 2147483647, %v780_v57  ;;  %vm231_vm12 = vcmp.lt.s32.totalorder %v780_v57, 0 }
  0x66   :  { %v233_v55 = vshrl.u32 %v232_v58, 23  ;;  %v236_v62 = vand.u32 8388607, %v229_v59  ;;  %vm230_vm13 = vcmp.le.f32.partialorder %v229_v59, 0.7853982 }
  0x68   :  { %v610_v60 = vadd.s32 4294967169, %v233_v55  ;;  %v237_v3 = vor.u32 8388608, %v236_v62  ;;  %v205_v62 = vcvt.s32.f32 %v204_v42 }
  0x6a   :  { %v239_v61 = vadd.s32 1, %v610_v60  ;;  %v790_v23 = vshll.u32 %v237_v3, 8 }
  0x6c   :  { %vm240_vm0 = vcmp.gt.s32.totalorder %v239_v61, 0  ;;  %v278_v34 = vand.u32 65535, %v790_v23  ;;  %v279_v35 = vshrl.u32 %v790_v23, 16 }
  0x6d   :  { %v241_v63 = vsel %vm240_vm0, %v239_v61, 0 }
  0x6e   :  { %v243_v0 = vand.u32 31, %v241_v63  ;;  %v786_v2 = vshrl.u32 %v241_v63, 5 }
  0x70   :  { %v244_v4 = vsub.s32 32, %v243_v0  ;;  %v246_v6 = vshll.u32 %v712_v5, %v243_v0  ;;  %v249_v8 = vshll.u32 %v713_v7, %v243_v0  ;;  %v252_v10 = vshll.u32 %v714_v9, %v243_v0 }
  0x71   :  { %v255_v12 = vshll.u32 %v715_v11, %v243_v0  ;;  %v258_v14 = vshll.u32 %v716_v13, %v243_v0  ;;  %vm261_vm1 = vcmp.lt.s32.totalorder %v786_v2, 1  ;;  %vm263_vm2 = vcmp.lt.s32.totalorder %v786_v2, 3 }
  0x72   :  { %v247_v15 = vshrl.u32 %v713_v7, %v244_v4  ;;  %v250_v16 = vshrl.u32 %v714_v9, %v244_v4  ;;  %v253_v17 = vshrl.u32 %v715_v11, %v244_v4  ;;  %v256_v18 = vshrl.u32 %v716_v13, %v244_v4 }
  0x73   :  { %v259_v20 = vshrl.u32 %v717_v19, %v244_v4  ;;  %vm264_vm3 = vcmp.lt.s32.totalorder %v786_v2, 4  ;;  %vm262_vm4 = vcmp.lt.s32.totalorder %v786_v2, 2  ;;  %v245_v44 = vshrl.u32 %v712_v5, %v244_v4 }
  0x74   :  { %v248_v21 = vor.u32 %v247_v15, %v246_v6  ;;  %v251_v22 = vor.u32 %v250_v16, %v249_v8  ;;  %v254_v24 = vor.u32 %v253_v17, %v252_v10  ;;  %v257_v25 = vor.u32 %v256_v18, %v255_v12 }
  0x75   :  { %v260_v26 = vor.u32 %v259_v20, %v258_v14  ;;  %v718_v4 = vmov 0   ;;  %v206_v19 = vmul.f32 5.9604645e-08, %v205_v62  ;;  %v123_v62 = vadd.s32 %v771_v36, %v92_v52 }
  0x76   :  { %v269_v27 = vsel %vm261_vm1, %v248_v21, %v251_v22  ;;  %v270_v29 = vsel %vm264_vm3, %v257_v25, 920167782  ;;  %v273_v30 = vsel %vm261_vm1, %v251_v22, %v254_v24  ;;  %v265_v63 = vsel %vm261_vm1, %v245_v44, %v248_v21 }
  0x77   :  { %v274_v31 = vsel %vm264_vm3, %v260_v26, 1326507024  ;;  %v271_v32 = vsel %vm263_vm2, %v254_v24, %v270_v29  ;;  %v266_v3 = vsel %vm264_vm3, %v254_v24, 2102212464  ;;  %v207_v28 = vmax.f32 %v206_v19, 1e-09 }
  0x78   :  { %v275_v33 = vsel %vm263_vm2, %v257_v25, %v274_v31  ;;  %v272_v37 = vsel %vm262_vm4, %v269_v27, %v271_v32  ;;  %v267_v13 = vsel %vm263_vm2, %v251_v22, %v266_v3  ;;  %v606_v45 = vshrl.u32 %v123_v62, 1 }
  0x79   :  { %v276_v38 = vsel %vm262_vm4, %v273_v30, %v275_v33  ;;  %v302_v41 = vand.u32 65535, %v272_v37  ;;  %v303_v43 = vshrl.u32 %v272_v37, 16  ;;  %v268_v24 = vsel %vm262_vm4, %v265_v63, %v267_v13 }
  0x7a   :  { %v280_v39 = vand.u32 65535, %v276_v38  ;;  %v281_v40 = vshrl.u32 %v276_v38, 16  ;;  %v322_v29 = vmul.u32 %v790_v23, %v268_v24  ;;  %628 = vlog2.f32 %v207_v28 }
  0x7b   :  { %v304_v50 = vmul.u32 %v302_v41, %v278_v34  ;;  %v305_v51 = vmul.u32 %v303_v43, %v278_v34  ;;  %v306_v53 = vmul.u32 %v302_v41, %v279_v35  ;;  %v307_v55 = vmul.u32 %v303_v43, %v279_v35 }
  0x7c   :  { %v282_v46 = vmul.u32 %v280_v39, %v278_v34  ;;  %v283_v48 = vmul.u32 %v281_v40, %v278_v34  ;;  %v284_v49 = vmul.u32 %v280_v39, %v279_v35  ;;  %v285_v54 = vmul.u32 %v281_v40, %v279_v35 }
  0x7d   :  { %v308_v60 = vshll.u32 %v305_v51, 16  ;;  %v310_v61 = vshll.u32 %v306_v53, 16  ;;  %v309_v11 = vshrl.u32 %v305_v51, 16  ;;  %v311_v17 = vshrl.u32 %v306_v53, 16 }
  0x7e   :  { %v286_v56 = vshll.u32 %v283_v48, 16  ;;  %v288_v58 = vshll.u32 %v284_v49, 16  ;;  %v287_v7 = vshrl.u32 %v283_v48, 16  ;;  %v289_v14 = vshrl.u32 %v284_v49, 16 }
  0x7f   :  { %vm312_vm6 = vc.u32 %v304_v50, %v308_v60  ;;  %v314_v6 = vadd.s32 %v308_v60, %v304_v50 }
  0x80   :  { %vm290_vm5 = vc.u32 %v282_v46, %v286_v56  ;;  %v292_v0 = vadd.s32 %v286_v56, %v282_v46  ;;  %v313_v9 = vsel %vm312_vm6, 1, %v718_v4  ;;  %v629_v34 = vpop.eup %628  ;;  %v124_v56 = vadd.s32 %v122_v47, %v754_v1 }
  0x81   :  { %v291_v5 = vsel %vm290_vm5, 1, %v718_v4  ;;  %v315_v12 = vadd.s32 %v313_v9, %v307_v55  ;;  %vm316_vm8 = vc.u32 %v314_v6, %v310_v61  ;;  %v318_v21 = vadd.s32 %v314_v6, %v310_v61 }
  0x82   :  { %v293_v8 = vadd.s32 %v291_v5, %v285_v54  ;;  %vm294_vm7 = vc.u32 %v292_v0, %v288_v58  ;;  %v317_v16 = vsel %vm316_vm8, 1, %v718_v4  ;;  %v214_v38 = vmul.f32 0.6931472, %v629_v34 }
  0x83   :  { %v295_v10 = vsel %vm294_vm7, 1, %v718_v4  ;;  %v319_v18 = vadd.s32 %v317_v16, %v315_v12  ;;  %v125_v63 = vadd.s32 2, %v124_v56  ;;  %vm372_vm6 = vweird.f32 %v780_v57 }
  0x84   :  { %v297_v15 = vadd.s32 %v295_v10, %v293_v8  ;;  %v822_v40 = vmul.f32 -2.0, %v214_v38  ;;  %v194_v10 = vshra.s32 %v606_v45, 7  ;;  %v565_v45 = vld [vmem:[#allocation6 + $0x8] sm:$0xff] }
  0x85   :  { %v320_v25 = vadd.s32 %v319_v18, %v309_v11  ;;  %v607_v1 = vshrl.u32 %v125_v63, 1 }
  0x86   :  { %v298_v20 = vadd.s32 %v297_v15, %v287_v7  ;;  %630 = vrsqrt.f32 %v822_v40  ;;  %v195_v16 = vcvt.s32.f32 %v194_v10  ;;  %vm223_vm14 = vcmp.eq.f32.partialorder %v822_v40, inf }
  0x87   :  { %v321_v27 = vadd.s32 %v320_v25, %v311_v17  ;;  %v199_v52 = vshra.s32 %v607_v1, 7  ;;  %vm225_vm1 = vcmp.eq.f32.partialorder %v822_v40, 0.0 }
  0x88   :  { %v299_v26 = vadd.s32 %v298_v20, %v289_v14  ;;  %v196_v25 = vmul.f32 5.9604645e-08, %v195_v16 }
  0x89   :  { %v325_v30 = vadd.s32 1, %v321_v27  ;;  %v200_v17 = vcvt.s32.f32 %v199_v52 }
  0x8a   :  { %vm324_vm9 = vc.u32 %v299_v26, %v318_v21  ;;  %v323_v23 = vadd.s32 %v318_v21, %v299_v26 }
  0x8b   :  { %v326_v22 = vsel %vm324_vm9, %v325_v30, %v321_v27  ;;  %v201_v26 = vmul.f32 5.9604645e-08, %v200_v17 }
  0x8c   :  { %v327_v31 = vadd.s32 %v326_v22, %v322_v29  ;;  %v631_v51 = vpop.eup %630 }
  0x8d   :  { %v217_v60 = vmul.f32 %v631_v51, %v822_v40  ;;  %v543_v34 = vmul.f32 2.0, %v201_v26 }
  0x8e   :  { %v328_v32 = vadd.s32 536870912, %v327_v31 }
  0x8f   :  { %v218_v3 = vmul.f32 %v631_v51, %v217_v60 }
  0x90   :  { %v329_v33 = vshrl.u32 %v328_v32, 30 }
  0x91   :  { %v219_v6 = vmul.f32 0.5, %v218_v3 }
  0x92   :  { %v330_v35 = vshll.u32 %v329_v33, 30  ;;  %v353_v4 = vsub.s32 4, %v329_v33 }
  0x93   :  { %v220_v13 = vsub.f32 1.5, %v219_v6 }
  0x94   :  { %v331_v37 = vsub.s32 %v327_v31, %v330_v35  ;;  %v354_v7 = vsel %vm231_vm12, %v353_v4, %v329_v33  ;;  %v542_v33 = vmul.f32 2.0, %v196_v25  ;;  %v226_v35 = vand.u32 2147483648, %v822_v40 }
  0x95   :  { %v356_v36 = vsel %vm230_vm13, 0, %v354_v7  ;;  %v221_v20 = vmul.f32 %v631_v51, %v220_v13 }
  0x96   :  { %vm332_vm10 = vcmp.lt.s32.totalorder %v331_v37, 0  ;;  %v333_v2 = vsub.s32 0, %v331_v37  ;;  %v528_v59 = vadd.s32 3, %v356_v36  ;;  %v373_v27 = vand.u32 3, %v356_v36 }
  0x97   :  { %v222_v22 = vmul.f32 %v221_v20, %v822_v40 }
  0x98   :  { %v334_v39 = vsel %vm332_vm10, %v333_v2, %v331_v37  ;;  %v529_v28 = vand.u32 3, %v528_v59  ;;  %vm378_vm15 = vcmp.eq.s32.totalorder %v373_v27, 2  ;;  %vm374_vm2 = vcmp.lt.s32.totalorder %v373_v27, 2 }
  0x99   :  { %v335_v41 = vclz %v334_v39  ;;  %v224_v2 = vsel %vm223_vm14, %v822_v40, %v222_v22  ;;  %vm375_vm3 = vcmp.eq.s32.totalorder %v373_v27, 0 }
  0x9a   :  { %vm534_vm0 = vcmp.eq.s32.totalorder %v529_v28, 2  ;;  %vm531_vm4 = vcmp.eq.s32.totalorder %v529_v28, 0  ;;  %vm530_vm5 = vcmp.lt.s32.totalorder %v529_v28, 2 }
  0x9b   :  { %v611_v42 = vadd.s32 4294967294, %v335_v41 }
  0x9d   :  { %vm612_vm11 = vcmp.lt.s32.totalorder %v611_v42, 0 }
  0x9e   :  { %v338_v43 = vsel %vm612_vm11, 0, %v611_v42 }
  0x9f   :  { %v339_v44 = vsub.s32 32, %v338_v43  ;;  %v340_v46 = vshll.u32 %v331_v37, %v338_v43  ;;  %v343_v48 = vsub.s32 4294967266, %v338_v43  ;;  %v541_v43 = vld [vmem:[#allocation3] sm:$0x3] }
  0xa0   :  { %v558_v60 = vperm.slane %v541_v43, 0 }
  0xa1   :  { %v341_v49 = vshrl.u32 %v323_v23, %v339_v44  ;;  %v344_v50 = vadd.s32 127, %v343_v48  ;;  %v540_v23 = vld [vmem:[%s852_s1] sm:$0x3]  ;;  %v616_v44 = vadd.f32 -1.0, %v542_v33  ;;  %v227_v48 = vsel %vm225_vm1, %v226_v35, %v224_v2  ;;  %s719_s1 = smov [#allocation8]  }
  0xa2   :  { %v550_v56 = vperm.slane %v540_v23, 1  ;;  %s577_s8 = sshll.u32 %s719_s1, 4  ;;  %s578_s8 = int_to_ptr.vmem [resolvable:$true] %s577_s8 }
  0xa3   :  { %v342_v53 = vor.u32 %v341_v49, %v340_v46  ;;  %v345_v54 = vshll.u32 %v344_v50, 23  ;;  %v617_v46 = vadd.f32 -1.0, %v543_v34 }
  0xa5   :  { %v346_v58 = vor.u32 4788187, %v345_v54  ;;  %v349_v55 = vcvt.s32.f32 %v342_v53  ;;  %v549_v54 = vperm.slane %v540_v23, 0 }
  0xa7   :  { %v347_v61 = vand.u32 2147483647, %v346_v58 }
  0xa9   :  { %v350_v0 = vmul.f32 %v349_v55, %v347_v61  ;;  %v559_v61 = vperm.slane %v541_v43, 1 }
  0xab   :  { %v351_v5 = vxor.u32 2147483648, %v350_v0 }
  0xad   :  { %v352_v47 = vsel %vm231_vm12, %v351_v5, %v350_v0  ;;  %v546_v0 = vmul.f32 0.1, %v616_v44  ;;  %v564_v5 = vld [vmem:[#allocation6] sm:$0xff] }
  0xae   :  { %v355_v8 = vsel %vm230_vm13, %v780_v57, %v352_v47  ;;  %v547_v57 = vmul.f32 0.1, %v617_v46 }
  0xaf   :  { %v357_v9 = vmul.f32 %v355_v8, %v355_v8  ;;  %v553_v40 = vadd.f32 %v549_v54, %v546_v0 }
  0xb0   :  { %v554_v1 = vadd.f32 %v550_v56, %v547_v57 }
  0xb1   :  { %v358_v11 = vmul.f32 -0.001358992, %v357_v9  ;;  %v365_v12 = vmul.f32 -0.00019511016, %v357_v9 }
  0xb3   :  { %v359_v14 = vadd.f32 0.041655596, %v358_v11  ;;  %v366_v15 = vadd.f32 0.008332121, %v365_v12 }
  0xb5   :  { %v360_v18 = vmul.f32 %v359_v14, %v357_v9  ;;  %v367_v19 = vmul.f32 %v366_v15, %v357_v9 }
  0xb7   :  { %v361_v21 = vadd.f32 -0.4999988, %v360_v18  ;;  %v368_v24 = vadd.f32 -0.16666654, %v367_v19 }
  0xb9   :  { %v362_v29 = vmul.f32 %v361_v21, %v357_v9  ;;  %v369_v30 = vmul.f32 %v368_v24, %v357_v9 }
  0xbb   :  { %v363_v31 = vadd.f32 1.0, %v362_v29  ;;  %v370_v32 = vadd.f32 1.0, %v369_v30 }
  0xbd   :  { %v371_v37 = vmul.f32 %v370_v32, %v355_v8  ;;  %v379_v38 = vxor.u32 2147483648, %v363_v31 }
  0xbf   :  { %v376_v39 = vxor.u32 2147483648, %v371_v37  ;;  %v380_v41 = vsel %vm378_vm15, %v379_v38, %v371_v37  ;;  %v536_v42 = vsel %vm534_vm0, %v379_v38, %v371_v37 }
  0xc1   :  { %v377_v49 = vsel %vm375_vm3, %v363_v31, %v376_v39  ;;  %v533_v50 = vsel %vm531_vm4, %v363_v31, %v376_v39 }
  0xc2   :  { %v381_v51 = vsel %vm374_vm2, %v377_v49, %v380_v41  ;;  %v537_v53 = vsel %vm530_vm5, %v533_v50, %v536_v42 }
  0xc3   :  { %v382_v58 = vsel %vm372_vm6, nan, %v381_v51  ;;  %v538_v55 = vsel %vm372_vm6, nan, %v537_v53 }
  0xc4   :  { %v383_v62 = vmul.f32 %v382_v58, %v227_v48  ;;  %v539_v63 = vmul.f32 %v538_v55, %v227_v48 }
  0xc6   :  { %v555_v3 = vmul.f32 0.05, %v383_v62  ;;  %v556_v4 = vmul.f32 0.05, %v539_v63 }
  0xc8   :  { %v562_v47 = vadd.f32 %v558_v60, %v555_v3  ;;  %v563_v6 = vadd.f32 %v559_v61, %v556_v4 }
  0xca   :  { %v566_v7 = vmul.f32 %v564_v5, %v562_v47  ;;  %v567_v8 = vmul.f32 %v565_v45, %v563_v6 }
  0xcc   :  { %v568_v9 = vadd.f32 %v566_v7, %v553_v40  ;;  %v569_v10 = vadd.f32 %v567_v8, %v554_v1 }
  0xce   :  { %570 = vst [vmem:[#allocation8] sm:$0xff] %v568_v9 }
  0xcf   :  { %571 = vst [vmem:[#allocation8 + $0x8] sm:$0xff] %v569_v10 }
  0xd0   :  { %582 = dma.vmem_to_hbm [thread:$0]  %s578_s8, 256, %s580_s11, [#allocation5]  }
  0xd1   :  { %708 = dma.done.wait [#allocation5], 256  }
  0xd2   :  { %709 = vsyncadd [#allocation5], 4294967040 }
  0xd3   :  { %587 = vsyncpa [#allocation4], 1 }
  0xd4   :  { %588 = vsyncpa [#allocation7], 1 }
  0xd5   :  { %589 = vsyncpa [#allocation5], 1 }

</bundles_post_ra>
